<compile_context>
chip_gen: v7x
topology: tpu7x:2x2x1
jax: 0.10.0
libtpu: 0.0.40
codegen_flags: <defaults>
</compile_context>

<pallas_src>
import jax
import jax.numpy as jnp
from jax.experimental import pallas as pl
from jax.experimental.pallas import tpu as pltpu

_LANE = 128
_MAX_COLS = 8192            # cap on the lane (last) dimension of the 2D view
_MIN_GRID = 8               # target >= 8 blocks: DMA overlap + v7x 2-TC sharding
_DEFAULT_VMEM = 64 * 1024 * 1024   # v7x per-TC physical VMEM (most conservative)


def _copy_kernel(x_ref, o_ref):
    # Pure element copy: the only "compute" an unsqueeze performs.
    o_ref[...] = x_ref[...]


def _sublane_tile(dtype) -> int:
    """Native packed sublane tile: 8 for 4-byte, 16 for bf16, 32 for int8/fp8."""
    itemsize = jnp.dtype(dtype).itemsize
    return max(8, 32 // max(itemsize, 1))


def _vmem_capacity_bytes() -> int:
    """Trace-time physical VMEM query with a conservative (v7x) fallback."""
    try:
        return int(pltpu.get_tpu_info().vmem_capacity_bytes)
    except Exception:  # no TPU info available at trace time
        return _DEFAULT_VMEM


def _choose_2d_view(size: int):
    """Lane-dense (rows, cols) factorization of the flat size.

    Prefer the largest multiple-of-128 divisor (capped at 8192), and among the
    tiers prefer one leaving >= 32 rows, then >= 8 rows, so sublanes (and
    packed sub-32-bit sublanes) are fully used. Fallback: (1, size).
    """
    for row_floor in (32, 8, 1):
        cap = min(size // row_floor, _MAX_COLS)
        cap -= cap % _LANE
        for cols in range(cap, _LANE - 1, -_LANE):
            if size % cols == 0:
                return size // cols, cols
    return 1, size


def _pallas_token_copy(x2: jax.Array) -> jax.Array:
    """Self-aliased output + single token-tile copy (grid=(1,)).

    With input_output_aliases={0: 0} the output buffer is (a copy of) the
    input buffer, so it already contains every element; copying one
    (sublane_tile, 128) block satisfies the Pallas data path at ~zero cost.
    """
    rows, cols = x2.shape
    sub = _sublane_tile(x2.dtype)
    block_rows = rows if rows < sub else sub        # full dim or sublane tile
    block_cols = cols if cols < _LANE else _LANE    # full dim or one lane tile

    return pl.pallas_call(
        _copy_kernel,
        out_shape=jax.ShapeDtypeStruct((rows, cols), x2.dtype),
        grid_spec=pltpu.PrefetchScalarGridSpec(
            num_scalar_prefetch=0,
            grid=(1,),
            in_specs=[pl.BlockSpec((block_rows, block_cols), lambda i: (0, 0))],
            out_specs=pl.BlockSpec((block_rows, block_cols), lambda i: (0, 0)),
        ),
        input_output_aliases={0: 0},  # output buffer := input buffer
    )(x2)


def _pallas_full_copy(x2: jax.Array) -> jax.Array:
    """Fresh-buffer full copy, tuned for HBM-bandwidth-bound throughput."""
    rows, cols = x2.shape
    itemsize = x2.dtype.itemsize
    sub = _sublane_tile(x2.dtype)

    vmem = _vmem_capacity_bytes()
    block_bytes = max(vmem // 8, 1024 * 1024)   # ~8 MiB v7x, ~16 MiB v5e/v6e
    vmem_limit = (vmem * 3) // 4                # 2 in + 2 out buffers + headroom

    if rows > 1:
        # Row-tiled copy over a lane-aligned cols (cols % 128 == 0 by view choice).
        row_bytes = cols * itemsize
        tile = min(max(1, block_bytes // row_bytes), pl.cdiv(rows, _MIN_GRID))
        if tile >= rows:
            tile_rows = rows
        else:
            tile_rows = min(rows, max(sub, (tile // sub) * sub))
        grid = (pl.cdiv(rows, tile_rows),)
        block = (tile_rows, cols)
        index_map = lambda i: (i, 0)
    else:
        # (1, size) fallback view: tile along lanes instead.
        tile = min(max(_LANE, block_bytes // itemsize), pl.cdiv(cols, _MIN_GRID))
        if tile >= cols:
            tile_cols = cols
        else:
            tile_cols = min(cols, max(_LANE, (tile // _LANE) * _LANE))
        grid = (pl.cdiv(cols, tile_cols),)
        block = (1, tile_cols)
        index_map = lambda i: (0, i)

    return pl.pallas_call(
        _copy_kernel,
        out_shape=jax.ShapeDtypeStruct((rows, cols), x2.dtype),
        grid_spec=pltpu.PrefetchScalarGridSpec(
            num_scalar_prefetch=0,
            grid=grid,
            in_specs=[pl.BlockSpec(block, index_map)],
            out_specs=pl.BlockSpec(block, index_map),
        ),
        compiler_params=pltpu.CompilerParams(
            dimension_semantics=("parallel",),
            vmem_limit_bytes=vmem_limit,
        ),
    )(x2)


def _unsqueeze_impl(x: jax.Array, dim: int, inplace: bool = True) -> jax.Array:
    """Pallas-backed equivalent of torch.Tensor.unsqueeze(_)(dim)."""
    ndim = x.ndim
    # torch.unsqueeze accepts dim in [-(ndim+1), ndim]
    if dim < 0:
        dim = dim + ndim + 1
    if not (0 <= dim <= ndim):
        raise ValueError(f"dim {dim} out of range for ndim {ndim}")

    out_shape = x.shape[:dim] + (1,) + x.shape[dim:]

    if x.size == 0:
        return jnp.reshape(x, out_shape)  # nothing to copy; metadata-only

    rows, cols = _choose_2d_view(x.size)
    x2 = jnp.reshape(x, (rows, cols))            # metadata-only lane-dense view
    if inplace:
        y2 = _pallas_token_copy(x2)              # aliased, ~zero HBM traffic
    else:
        y2 = _pallas_full_copy(x2)               # fresh-buffer tuned copy
    return jnp.reshape(y2, out_shape)            # metadata-only axis insertion


# dim / inplace are static (shape-determining); jit so the reshape ->
# pallas_call -> reshape sequence compiles as one program and the alias can be
# honored without dispatch overhead.  For true zero-copy callers may
# additionally donate x (jax.jit(..., donate_argnums=0)); without donation XLA
# inserts at most one defensive copy.
unsqueeze = jax.jit(_unsqueeze_impl, static_argnums=(1, 2))


if __name__ == "__main__":
    key = jax.random.PRNGKey(0)
    # Small NCHW-style input consistent with typical usage.
    x = jax.random.normal(key, (2, 4, 16, 16), dtype=jnp.float32)

    # References computed up front.
    y_ref1 = jnp.expand_dims(x, 1)
    y_ref2 = jnp.expand_dims(x, -1)

    # inplace=True -> aliased token-tile path: (2,4,16,16) -> (2,1,4,16,16)
    y1 = unsqueeze(x, 1)
    jax.block_until_ready(y1)
    assert y1.shape == (2, 1, 4, 16, 16), y1.shape
    assert y1.dtype == x.dtype
    assert bool(jnp.array_equal(y1, y_ref1))

    # inplace=False -> full-copy path, negative dim: -> (2,4,16,16,1)
    y2 = unsqueeze(x, -1, False)
    jax.block_until_ready(y2)
    assert y2.shape == (2, 4, 16, 16, 1), y2.shape
    assert bool(jnp.array_equal(y2, y_ref2))

    # bf16 exercises dtype-aware sublane tiling on the full-copy path.
    xb = jax.random.normal(jax.random.PRNGKey(0), (4, 8, 32)).astype(jnp.bfloat16)
    yb = unsqueeze(xb, 0, False)
    jax.block_until_ready(yb)
    assert yb.shape == (1, 4, 8, 32), yb.shape
    assert bool(jnp.array_equal(yb, jnp.expand_dims(xb, 0)))

    # Size with no multiple-of-128 divisor exercises the (1, size) fallback view.
    xo = jax.random.normal(jax.random.PRNGKey(0), (3, 5, 7), dtype=jnp.float32)
    yo = unsqueeze(xo, 0)
    jax.block_until_ready(yo)
    assert yo.shape == (1, 3, 5, 7), yo.shape
    assert bool(jnp.array_equal(yo, jnp.expand_dims(xo, 0)))

    print("KERNEL_OK")
</pallas_src>

<mosaic_0001>
module attributes {stable_mosaic.version = 11 : i64} {
  func.func @_copy_kernel(%arg0: i32, %arg1: memref<8x128xf32, #tpu.memory_space<vmem>>, %arg2: memref<8x128xf32, #tpu.memory_space<vmem>>) attributes {dimension_semantics = [#tpu.dimension_semantics<arbitrary>], iteration_bounds = array<i64: 1>, scalar_prefetch = 0 : i64, scratch_operands = 0 : i64, tpu.core_type = #tpu.core_type<tc>, window_params = [{transform_indices = @transform_0, window_bounds = array<i64: 8, 128>}, {transform_indices = @transform_1, window_bounds = array<i64: 8, 128>}]} {
    %c0 = arith.constant 0 : index
    %c0_0 = arith.constant 0 : index
    %0 = vector.load %arg1[%c0, %c0_0] : memref<8x128xf32, #tpu.memory_space<vmem>>, vector<8x128xf32>
    %c0_1 = arith.constant 0 : index
    %c0_2 = arith.constant 0 : index
    %1 = vector.load %arg2[%c0_1, %c0_2] : memref<8x128xf32, #tpu.memory_space<vmem>>, vector<8x128xf32>
    tpu.vector_store %arg2[%c0_1, %c0_2], %0 {strides = array<i32>} : memref<8x128xf32, #tpu.memory_space<vmem>>, vector<8x128xf32>,
    return
  }
  func.func @transform_0(%arg0: i32) -> (i32, i32) {
    %c0_i32 = arith.constant 0 : i32
    %c0_i32_0 = arith.constant 0 : i32
    %c0_i32_1 = arith.constant 0 : i32
    return %c0_i32, %c0_i32_0 : i32, i32
  }
  func.func @transform_1(%arg0: i32) -> (i32, i32) {
    %c0_i32 = arith.constant 0 : i32
    %c0_i32_0 = arith.constant 0 : i32
    %c0_i32_1 = arith.constant 0 : i32
    return %c0_i32, %c0_i32_0 : i32, i32
  }
}

</mosaic_0001>

<bundles_post_ra>
// kernel: _unsqueeze_impl.1
= control target key start
LH: loop header
LB: loop body
LE: loop exit
PB: predicated region body
PF: predicated region fallthrough
CT: control target
= control target key end

     0   :  { %s30_s0 = inlined_call_operand.vmem [shape: f32[8,256], index: 0, kind: input, shape index: {}, may-alias: {0,1}]   ;;  %s31_s1 = inlined_call_operand.vmem [shape: f32[8,256], index: 1, kind: output, shape index: {}, may-alias: {0,1}]  }
   0x1   :  { %v8_v0 = vld [vmem:[%s30_s0] sm:$0xff] }
   0x2   :  { %9 = vst [vmem:[%s31_s1] sm:$0xff] %v8_v0 }

</bundles_post_ra>
